<compile_context>
chip_gen: v7x
topology: tpu7x:2x2x1
jax: 0.10.0
libtpu: 0.0.40
codegen_flags: <defaults>
</compile_context>

<pallas_src>
import jax
import jax.numpy as jnp
from jax import lax
from jax.experimental import pallas as pl
from jax.experimental.pallas import tpu as pltpu


# ----------------------------- Pallas kernel ------------------------------ #
def _diff_embed_kernel(steps_ref,            # VMEM (TB, 1) int32
                       table_ref,            # VMEM (S, E)  f32 (S padded to mult. of 8)
                       w1_ref, b1_ref,       # VMEM (E, P), (1, P)
                       w2_ref, b2_ref,       # VMEM (P, P), (1, P)
                       o_ref):               # VMEM (TB, P)
    """out = silu(silu(one_hot(steps) @ table @ w1 + b1) @ w2 + b2), all in vregs."""
    TB = o_ref.shape[0]
    S = table_ref.shape[0]

    # Fused gather as a one-hot MXU matmul (no scratch, no per-row dynamic slices).
    steps = steps_ref[...]                                            # (TB, 1) int32
    iota = lax.broadcasted_iota(jnp.int32, (TB, S), 1)                # (TB, S)
    one_hot = (iota == steps).astype(jnp.float32)                     # (TB, S)
    x = jnp.dot(one_hot, table_ref[...],
                preferred_element_type=jnp.float32)                   # (TB, E)

    h = jnp.dot(x, w1_ref[...], preferred_element_type=jnp.float32) + b1_ref[...]
    h = h * jax.nn.sigmoid(h)                                         # SiLU in f32

    y = jnp.dot(h, w2_ref[...], preferred_element_type=jnp.float32) + b2_ref[...]
    y = y * jax.nn.sigmoid(y)

    o_ref[...] = y.astype(o_ref.dtype)


def _mlp_silu_pallas(steps_2d, table, w1t, b1r, w2t, b2r, tb):
    """steps_2d: (B_pad, 1) int32; table: (S, E); w1t: (E, P); b1r: (1, P);
       w2t: (P, P); b2r: (1, P).  Returns (B_pad, P) f32.  tb divides B_pad."""
    B_pad = steps_2d.shape[0]
    S, E = table.shape
    P = w1t.shape[1]
    grid = (B_pad // tb,)

    return pl.pallas_call(
        _diff_embed_kernel,
        out_shape=jax.ShapeDtypeStruct((B_pad, P), jnp.float32),
        grid=grid,
        in_specs=[
            pl.BlockSpec((tb, 1), lambda i: (i, 0)),     # steps (tiled over batch)
            pl.BlockSpec((S, E), lambda i: (0, 0)),      # embedding table (resident)
            pl.BlockSpec((E, P), lambda i: (0, 0)),      # w1^T
            pl.BlockSpec((1, P), lambda i: (0, 0)),      # b1
            pl.BlockSpec((P, P), lambda i: (0, 0)),      # w2^T
            pl.BlockSpec((1, P), lambda i: (0, 0)),      # b2
        ],
        out_specs=pl.BlockSpec((tb, P), lambda i: (i, 0)),
        compiler_params=pltpu.CompilerParams(
            dimension_semantics=("parallel",)),          # batch tiles are independent
    )(steps_2d, table, w1t, b1r, w2t, b2r)


# ------------------------- module (parameters + fwd) ----------------------- #
def build_embedding(num_steps: int, dim: int) -> jnp.ndarray:
    """Matches DiffusionEmbedding._build_embedding of the provided spec exactly:
       frequencies = 10.0 ** (arange(dim) / (dim - 1)), with dim = embedding_dim / 2.
       (The spec as given has NO *4.0 factor on the exponent; kept faithful to it.)"""
    steps = jnp.arange(num_steps, dtype=jnp.float32)[:, None]          # (S, 1)
    freqs = 10.0 ** (jnp.arange(dim, dtype=jnp.float32) / (dim - 1))   # (dim,)
    table = steps * freqs                                              # (S, dim)
    return jnp.concatenate([jnp.sin(table), jnp.cos(table)], axis=1)   # (S, 2*dim)


def init_diffusion_embedding(key, num_steps: int, embedding_dim: int = 128,
                             projection_dim: int = None):
    if projection_dim is None:
        projection_dim = embedding_dim
    k1, k2, k3, k4 = jax.random.split(key, 4)
    # nn.Linear-like uniform init on (out, in); transposed ONCE here so the forward
    # pass never materializes a transpose.
    bound1 = 1.0 / float(jnp.sqrt(embedding_dim))
    bound2 = 1.0 / float(jnp.sqrt(projection_dim))
    w1 = jax.random.uniform(k1, (projection_dim, embedding_dim),
                            jnp.float32, -bound1, bound1)
    w2 = jax.random.uniform(k3, (projection_dim, projection_dim),
                            jnp.float32, -bound2, bound2)

    emb = build_embedding(num_steps, embedding_dim // 2)               # (S, E)
    # Pad the step axis to a multiple of 8 (sublane-friendly, and keeps the one-hot
    # contraction dim aligned).  Padded rows are zero and unreachable (steps clamped).
    s_pad = ((num_steps + 7) // 8) * 8
    emb = jnp.pad(emb, ((0, s_pad - num_steps), (0, 0)))

    params = {
        "embedding": emb,                                              # (S_pad, E)
        "num_steps": jnp.int32(num_steps),                             # for clamping
        "w1t": w1.T,                                                   # (E, P)
        "b1": jax.random.uniform(k2, (1, projection_dim), jnp.float32, -bound1, bound1),
        "w2t": w2.T,                                                   # (P, P)
        "b2": jax.random.uniform(k4, (1, projection_dim), jnp.float32, -bound2, bound2),
    }
    return params


@jax.jit
def diffusion_embedding_forward(params, diffusion_step):
    """Semantics of DiffusionEmbedding.forward:
       x = embedding[diffusion_step]; x = silu(proj1(x)); return silu(proj2(x)).
       `diffusion_step` may be a scalar int (returns (P,)) or a 1-D int array
       (returns (B, P)).  Pass jnp.arange(num_steps) once to precompute the full
       (num_steps, P) output table for an inference sampling loop.
    """
    # TODO(synk): no _lerp_embedding path for float timesteps; the spec only indexes
    # the table with integer steps.
    steps = jnp.asarray(diffusion_step, dtype=jnp.int32)
    squeeze = (steps.ndim == 0)
    steps_1d = steps.reshape((-1,))
    B = steps_1d.shape[0]

    # Clamp: Pallas VMEM refs are not bounds-checked; OOB would read garbage.
    steps_1d = jnp.clip(steps_1d, 0, params["num_steps"] - 1)

    # Pad batch to a stable, sublane-aligned size; tile at 256 rows for large B
    # (parallel grid axis -> megacore sharding + better MXU row occupancy).
    B_pad = max(8, ((B + 7) // 8) * 8)
    if B_pad > 256:
        B_pad = ((B_pad + 255) // 256) * 256
        tb = 256
    else:
        tb = B_pad
    steps_2d = jnp.pad(steps_1d, (0, B_pad - B)).reshape(B_pad, 1)

    out = _mlp_silu_pallas(steps_2d, params["embedding"],
                           params["w1t"], params["b1"],
                           params["w2t"], params["b2"], tb)            # (B_pad, P)
    out = out[:B]
    return out[0] if squeeze else out


# ------------------------ pure-JAX reference check ------------------------- #
def _reference_forward(params, diffusion_step):
    x = params["embedding"][jnp.asarray(diffusion_step, dtype=jnp.int32)]
    h = x @ params["w1t"] + params["b1"][0]
    h = h * jax.nn.sigmoid(h)
    y = h @ params["w2t"] + params["b2"][0]
    return y * jax.nn.sigmoid(y)


if __name__ == "__main__":
    key = jax.random.PRNGKey(0)
    num_steps = 50
    embedding_dim = 128
    params = init_diffusion_embedding(key, num_steps, embedding_dim)

    # scalar diffusion step (matches the module's `diffusion_step: int` signature)
    step = jnp.int32(7)
    out_scalar = jax.block_until_ready(diffusion_embedding_forward(params, step))

    # small batch of steps
    steps = jnp.array([0, 3, 7, 11, 19, 23, 31, 49], dtype=jnp.int32)
    out_batch = jax.block_until_ready(diffusion_embedding_forward(params, steps))

    # "precompute once" inference pattern: one kernel call for ALL timesteps, then the
    # diffusion sampling loop only needs out_table[t] (plain XLA row gather).
    all_steps = jnp.arange(num_steps, dtype=jnp.int32)
    out_table = jax.block_until_ready(diffusion_embedding_forward(params, all_steps))

    ref_scalar = _reference_forward(params, step)
    ref_batch = _reference_forward(params, steps)
    ref_table = _reference_forward(params, all_steps)

    assert out_scalar.shape == (embedding_dim,)
    assert out_batch.shape == (steps.shape[0], embedding_dim)
    assert out_table.shape == (num_steps, embedding_dim)
    assert jnp.allclose(out_scalar, ref_scalar, atol=1e-5, rtol=1e-5)
    assert jnp.allclose(out_batch, ref_batch, atol=1e-5, rtol=1e-5)
    assert jnp.allclose(out_table, ref_table, atol=1e-5, rtol=1e-5)
    assert jnp.allclose(out_table[7], out_scalar, atol=1e-5, rtol=1e-5)

    print("KERNEL_OK")
</pallas_src>

<mosaic_0001>
module attributes {stable_mosaic.version = 11 : i64} {
  func.func @_diff_embed_kernel(%arg0: i32, %arg1: memref<8x1xi32, #tpu.memory_space<vmem>>, %arg2: memref<56x128xf32, #tpu.memory_space<vmem>>, %arg3: memref<128x128xf32, #tpu.memory_space<vmem>>, %arg4: memref<1x128xf32, #tpu.memory_space<vmem>>, %arg5: memref<128x128xf32, #tpu.memory_space<vmem>>, %arg6: memref<1x128xf32, #tpu.memory_space<vmem>>, %arg7: memref<8x128xf32, #tpu.memory_space<vmem>>) attributes {dimension_semantics = [#tpu.dimension_semantics<parallel>], iteration_bounds = array<i64: 1>, scalar_prefetch = 0 : i64, scratch_operands = 0 : i64, tpu.core_type = #tpu.core_type<tc>, window_params = [{transform_indices = @transform_0, window_bounds = array<i64: 8, 1>}, {pipeline_mode = #tpu.pipeline_mode<synchronous>, transform_indices = @transform_1, window_bounds = array<i64: 56, 128>}, {pipeline_mode = #tpu.pipeline_mode<synchronous>, transform_indices = @transform_2, window_bounds = array<i64: 128, 128>}, {pipeline_mode = #tpu.pipeline_mode<synchronous>, transform_indices = @transform_3, window_bounds = array<i64: 1, 128>}, {pipeline_mode = #tpu.pipeline_mode<synchronous>, transform_indices = @transform_4, window_bounds = array<i64: 128, 128>}, {pipeline_mode = #tpu.pipeline_mode<synchronous>, transform_indices = @transform_5, window_bounds = array<i64: 1, 128>}, {transform_indices = @transform_6, window_bounds = array<i64: 8, 128>}]} {
    %c0 = arith.constant 0 : index
    %c0_0 = arith.constant 0 : index
    %0 = vector.load %arg1[%c0, %c0_0] : memref<8x1xi32, #tpu.memory_space<vmem>>, vector<8x1xi32>
    %1 = tpu.iota {dimensions = array<i32: 1>} : vector<8x56xi32>
    %2 = vector.broadcast %0 : vector<8x1xi32> to vector<8x56xi32>
    %3 = arith.cmpi eq, %1, %2 : vector<8x56xi32>
    %4 = arith.extui %3 : vector<8x56xi1> to vector<8x56xi32>
    %5 = arith.sitofp %4 : vector<8x56xi32> to vector<8x56xf32>
    %c0_1 = arith.constant 0 : index
    %c0_2 = arith.constant 0 : index
    %6 = vector.load %arg2[%c0_1, %c0_2] : memref<56x128xf32, #tpu.memory_space<vmem>>, vector<56x128xf32>
    %cst = arith.constant dense<0.000000e+00> : vector<8x128xf32>
    %7 = tpu.matmul %5, %6, %cst {dimension_numbers = #tpu.dot_dimension_numbers<[1], [0], [0], [1], [0, 0, 1, 1], [], []>} : vector<8x56xf32>, vector<56x128xf32>, vector<8x128xf32> -> vector<8x128xf32>
    %c0_3 = arith.constant 0 : index
    %c0_4 = arith.constant 0 : index
    %8 = vector.load %arg3[%c0_3, %c0_4] : memref<128x128xf32, #tpu.memory_space<vmem>>, vector<128x128xf32>
    %cst_5 = arith.constant dense<0.000000e+00> : vector<8x128xf32>
    %9 = tpu.matmul %7, %8, %cst_5 {dimension_numbers = #tpu.dot_dimension_numbers<[1], [0], [0], [1], [0, 0, 1, 1], [], []>} : vector<8x128xf32>, vector<128x128xf32>, vector<8x128xf32> -> vector<8x128xf32>
    %c0_6 = arith.constant 0 : index
    %c0_7 = arith.constant 0 : index
    %10 = vector.load %arg4[%c0_6, %c0_7] : memref<1x128xf32, #tpu.memory_space<vmem>>, vector<1x128xf32>
    %11 = vector.broadcast %10 : vector<1x128xf32> to vector<8x128xf32>
    %12 = arith.addf %9, %11 : vector<8x128xf32>
    %13 = arith.negf %12 : vector<8x128xf32>
    %14 = math.exp %13 : vector<8x128xf32>
    %cst_8 = arith.constant 1.000000e+00 : f32
    %15 = vector.broadcast %cst_8 : f32 to vector<8x128xf32>
    %16 = arith.addf %15, %14 : vector<8x128xf32>
    %17 = arith.divf %15, %16 : vector<8x128xf32>
    %18 = arith.mulf %12, %17 : vector<8x128xf32>
    %c0_9 = arith.constant 0 : index
    %c0_10 = arith.constant 0 : index
    %19 = vector.load %arg5[%c0_9, %c0_10] : memref<128x128xf32, #tpu.memory_space<vmem>>, vector<128x128xf32>
    %cst_11 = arith.constant dense<0.000000e+00> : vector<8x128xf32>
    %20 = tpu.matmul %18, %19, %cst_11 {dimension_numbers = #tpu.dot_dimension_numbers<[1], [0], [0], [1], [0, 0, 1, 1], [], []>} : vector<8x128xf32>, vector<128x128xf32>, vector<8x128xf32> -> vector<8x128xf32>
    %c0_12 = arith.constant 0 : index
    %c0_13 = arith.constant 0 : index
    %21 = vector.load %arg6[%c0_12, %c0_13] : memref<1x128xf32, #tpu.memory_space<vmem>>, vector<1x128xf32>
    %22 = vector.broadcast %21 : vector<1x128xf32> to vector<8x128xf32>
    %23 = arith.addf %20, %22 : vector<8x128xf32>
    %24 = arith.negf %23 : vector<8x128xf32>
    %25 = math.exp %24 : vector<8x128xf32>
    %cst_14 = arith.constant 1.000000e+00 : f32
    %26 = vector.broadcast %cst_14 : f32 to vector<8x128xf32>
    %27 = arith.addf %26, %25 : vector<8x128xf32>
    %28 = arith.divf %26, %27 : vector<8x128xf32>
    %29 = arith.mulf %23, %28 : vector<8x128xf32>
    %c0_15 = arith.constant 0 : index
    %c0_16 = arith.constant 0 : index
    %30 = vector.load %arg7[%c0_15, %c0_16] : memref<8x128xf32, #tpu.memory_space<vmem>>, vector<8x128xf32>
    tpu.vector_store %arg7[%c0_15, %c0_16], %29 {strides = array<i32>} : memref<8x128xf32, #tpu.memory_space<vmem>>, vector<8x128xf32>,
    return
  }
  func.func @transform_0(%arg0: i32) -> (i32, i32) {
    %c0_i32 = arith.constant 0 : i32
    %c0_i32_0 = arith.constant 0 : i32
    return %arg0, %c0_i32 : i32, i32
  }
  func.func @transform_1(%arg0: i32) -> (i32, i32) {
    %c0_i32 = arith.constant 0 : i32
    %c0_i32_0 = arith.constant 0 : i32
    %c0_i32_1 = arith.constant 0 : i32
    return %c0_i32, %c0_i32_0 : i32, i32
  }
  func.func @transform_2(%arg0: i32) -> (i32, i32) {
    %c0_i32 = arith.constant 0 : i32
    %c0_i32_0 = arith.constant 0 : i32
    %c0_i32_1 = arith.constant 0 : i32
    return %c0_i32, %c0_i32_0 : i32, i32
  }
  func.func @transform_3(%arg0: i32) -> (i32, i32) {
    %c0_i32 = arith.constant 0 : i32
    %c0_i32_0 = arith.constant 0 : i32
    %c0_i32_1 = arith.constant 0 : i32
    return %c0_i32, %c0_i32_0 : i32, i32
  }
  func.func @transform_4(%arg0: i32) -> (i32, i32) {
    %c0_i32 = arith.constant 0 : i32
    %c0_i32_0 = arith.constant 0 : i32
    %c0_i32_1 = arith.constant 0 : i32
    return %c0_i32, %c0_i32_0 : i32, i32
  }
  func.func @transform_5(%arg0: i32) -> (i32, i32) {
    %c0_i32 = arith.constant 0 : i32
    %c0_i32_0 = arith.constant 0 : i32
    %c0_i32_1 = arith.constant 0 : i32
    return %c0_i32, %c0_i32_0 : i32, i32
  }
  func.func @transform_6(%arg0: i32) -> (i32, i32) {
    %c0_i32 = arith.constant 0 : i32
    %c0_i32_0 = arith.constant 0 : i32
    return %arg0, %c0_i32 : i32, i32
  }
}

</mosaic_0001>

<bundles_post_ra>
// kernel: diffusion_embedding_forward.1
= control target key start
LH: loop header
LB: loop body
LE: loop exit
PB: predicated region body
PF: predicated region fallthrough
CT: control target
= control target key end

     0   :  { %11 = vsyncpa [#allocation3], 0  ;;  %s771_s0 = inlined_call_operand.vmem [shape: s32[8,1], index: 0, kind: input, shape index: {}]   ;;  %s772_s1 = inlined_call_operand.hbm [shape: f32[56,128], index: 1, kind: input, shape index: {}]   ;;  %s773_s2 = inlined_call_operand.hbm [shape: f32[128,128], index: 2, kind: input, shape index: {}]   ;;  %s774_s3 = inlined_call_operand.vmem [shape: f32[1,128], index: 3, kind: input, shape index: {}]   ;;  %s775_s4 = inlined_call_operand.hbm [shape: f32[128,128], index: 4, kind: input, shape index: {}]   ;;  %s776_s5 = inlined_call_operand.vmem [shape: f32[1,128], index: 5, kind: input, shape index: {}]   ;;  %s777_s6 = inlined_call_operand.vmem [shape: f32[8,128], index: 6, kind: output, shape index: {}]  }
   0x1   :  { %12 = vsyncpa [#allocation5], 0  ;;  %s641_s21 = smov [#allocation4]   ;;  %s642_s23 = smov [#allocation2]  }
   0x2   :  { %s32_s22 = sshll.u32 %s641_s21, 4  ;;  %s20_s24 = sshll.u32 %s642_s23, 4  ;;  %s33_s22 = int_to_ptr.vmem [resolvable:$true] %s32_s22  ;;  %s685_s24 = int_to_ptr.vmem [resolvable:$true] %s20_s24 }
   0x3   :  { %s571_s27 = scalar_lea.hbm %s773_s2, 2048 }
   0x4   :  { %p572_p0 = scmp.ne.s32.totalorder %s773_s2, %s571_s27  ;;  %p575_p1 = scmp.lt.u32.totalorder %s571_s27, %s773_s2 }
   0x6   :  { %p577_p2 = pnand %p575_p1, %p572_p0 }
   0x8   :  { %580 = shalt.err (!%p577_p2)
}
   0x9   :  { %s581_s8 = scalar_lea.vmem %s33_s22, 2048  ;;  %p586_p4 = scmp.lt.s32.totalorder %s33_s22, %s33_s22 }
   0xa   :  { %p582_p3 = scmp.ne.s32.totalorder %s33_s22, %s581_s8  ;;  %p587_p5 = scmp.lt.s32.totalorder %s581_s8, %s581_s8 }
   0xc   :  { %p588_p6 = por %p587_p5, %p586_p4 }
   0xe   :  { %p589_p7 = pnand %p588_p6, %p582_p3 }
  0x10   :  { %592 = shalt.err (!%p589_p7)
}
  0x11   :  { %s643_s9 = smov 128   ;;  %s644_s10 = smov 8  }
  0x12   :  { %38 = dma.hbm_to_vmem [thread:$0]  %s773_s2, 2048, %s33_s22, [#allocation5], %s643_s9, %s643_s9, %s644_s10  }
  0x13   :  { %s593_s15 = scalar_lea.hbm %s772_s1, 896 }
  0x14   :  { %p594_p8 = scmp.ne.s32.totalorder %s772_s1, %s593_s15  ;;  %p597_p9 = scmp.lt.u32.totalorder %s593_s15, %s772_s1 }
  0x16   :  { %p599_p10 = pnand %p597_p9, %p594_p8 }
  0x18   :  { %602 = shalt.err (!%p599_p10)
}
  0x19   :  { %s603_s20 = scalar_lea.vmem %s685_s24, 896  ;;  %p608_p12 = scmp.lt.s32.totalorder %s685_s24, %s685_s24 }
  0x1a   :  { %p604_p11 = scmp.ne.s32.totalorder %s685_s24, %s603_s20  ;;  %p609_p13 = scmp.lt.s32.totalorder %s603_s20, %s603_s20 }
  0x1c   :  { %p610_p0 = por %p609_p13, %p608_p12 }
  0x1e   :  { %p611_p1 = pnand %p610_p0, %p604_p11 }
  0x20   :  { %614 = shalt.err (!%p611_p1)
}
  0x21   :  { %26 = dma.hbm_to_vmem [thread:$0]  %s772_s1, 896, %s685_s24, [#allocation3], %s643_s9, %s643_s9, %s644_s10  }
  0x22   :  { %s645_s22 = smov [#allocation6]   ;;  %s615_s27 = scalar_lea.hbm %s775_s4, 2048 }
  0x23   :  { %s46_s23 = sshll.u32 %s645_s22, 4  ;;  %p616_p2 = scmp.ne.s32.totalorder %s775_s4, %s615_s27  ;;  %s47_s23 = int_to_ptr.vmem [resolvable:$true] %s46_s23 }
  0x24   :  { %p619_p3 = scmp.lt.u32.totalorder %s615_s27, %s775_s4 }
  0x26   :  { %p621_p4 = pnand %p619_p3, %p616_p2 }
  0x28   :  { %624 = shalt.err (!%p621_p4)
}
  0x29   :  { %s625_s8 = scalar_lea.vmem %s47_s23, 2048  ;;  %p630_p6 = scmp.lt.s32.totalorder %s47_s23, %s47_s23 }
  0x2a   :  { %p626_p5 = scmp.ne.s32.totalorder %s47_s23, %s625_s8  ;;  %p631_p7 = scmp.lt.s32.totalorder %s625_s8, %s625_s8 }
  0x2c   :  { %p632_p8 = por %p631_p7, %p630_p6 }
  0x2e   :  { %p633_p9 = pnand %p632_p8, %p626_p5 }
  0x30   :  { %636 = shalt.err (!%p633_p9)
}
  0x31   :  { %52 = dma.hbm_to_vmem [thread:$0]  %s775_s4, 2048, %s47_s23, [#allocation5], %s643_s9, %s643_s9, %s644_s10  }
  0x32   :  { %637 = dma.done.wait [#allocation3], 896  }
  0x33   :  { %638 = vsyncadd [#allocation3], 4294966400 }
  0x34   :  { %639 = dma.done.wait [#allocation5], 4096  }
  0x35   :  { %640 = vsyncadd [#allocation5], 4294963200  ;;  %v646_v0 = vmov 0   ;;  %v647_v1 = vmov 0.0|0.0   ;;  %v64_v2 = vld [vmem:[%s771_s0] sm:$0xff]  ;;  %v74_v4 = vld [vmem:[#allocation2 + $0x8] sm:$0xff]  ;;  %v65_v38 = vlaneseq }
  0x36   :  { %562 = vset.pattern.permute.xlu0 %v646_v0  ;;  %496 = vmatprep.subr.bf16.mxu0 %v647_v1  ;;  %v73_v3 = vld [vmem:[#allocation2] sm:$0xff]  ;;  %v75_v6 = vld [vmem:[#allocation2 + $0x10] sm:$0xff]  ;;  %v76_v7 = vld [vmem:[#allocation2 + $0x18] sm:$0xff]  ;;  %vm648_vm0 = vmmov 0   ;;  %v649_v8 = vmov 0.0   ;;  %vm80_vm1 = vcmask 457728  }
  0x37   :  { %505 = vmatprep.subr.bf16.mxu1 %v647_v1  ;;  %68 = vperm.xlu0 %562, %v64_v2   ;;  %v497_v5 = vpack.c.bf16 %v74_v4, %v73_v3  ;;  %v500_v9 = vpack.c.bf16 %v76_v7, %v75_v6  ;;  %v154_v10 = vld [vmem:[#allocation4] sm:$0xff]  ;;  %v155_v11 = vld [vmem:[#allocation4 + $0x8] sm:$0xff]  ;;  %v156_v12 = vld [vmem:[#allocation4 + $0x10] sm:$0xff]  ;;  %v66_v39 = vand.u32 127, %v65_v38 }
  0x38   :  { %423 = vmatprep.mubr.msk.f32.mxu0 %vm648_vm0, %v649_v8  ;;  %458 = vmatprep.mubr.msk.f32.mxu1 %vm648_vm0, %v649_v8  ;;  %v77_v13 = vld [vmem:[#allocation2 + $0x20] sm:$0xff]  ;;  %v78_v14 = vld [vmem:[#allocation2 + $0x28] sm:$0xff]  ;;  %v506_v15 = vpack.c.bf16 %v155_v11, %v154_v10  ;;  %v157_v16 = vld [vmem:[#allocation4 + $0x18] sm:$0xff] }
  0x39   :  { %498 = vmatpush3.bf16.msra.mxu0 %v497_v5  ;;  %v509_v17 = vpack.c.bf16 %v157_v16, %v156_v12  ;;  %v503_v18 = vpack.c.bf16 %v78_v14, %v77_v13  ;;  %v158_v19 = vld [vmem:[#allocation4 + $0x20] sm:$0xff]  ;;  %v159_v20 = vld [vmem:[#allocation4 + $0x28] sm:$0xff]  ;;  %v160_v22 = vld [vmem:[#allocation4 + $0x30] sm:$0xff] }
  0x3a   :  { %499 = vmatprep.subr.bf16.mxu0 %v647_v1  ;;  %507 = vmatpush3.bf16.msra.mxu1 %v506_v15  ;;  %v512_v21 = vpack.c.bf16 %v159_v20, %v158_v19  ;;  %v161_v23 = vld [vmem:[#allocation4 + $0x38] sm:$0xff]  ;;  %v162_v26 = vld [vmem:[#allocation4 + $0x40] sm:$0xff]  ;;  %v163_v27 = vld [vmem:[#allocation4 + $0x48] sm:$0xff] }
  0x3b   :  { %508 = vmatprep.subr.bf16.mxu1 %v647_v1  ;;  %v79_v24 = vld [vmem:[#allocation2 + $0x30] sm:$0xff]  ;;  %v515_v25 = vpack.c.bf16 %v161_v23, %v160_v22  ;;  %v518_v28 = vpack.c.bf16 %v163_v27, %v162_v26  ;;  %v164_v29 = vld [vmem:[#allocation4 + $0x50] sm:$0xff]  ;;  %v166_v32 = vld [vmem:[#allocation4 + $0x60] sm:$0xff] }
  0x3c   :  { %v165_v30 = vld [vmem:[#allocation4 + $0x58] sm:$0xff]  ;;  %v167_v33 = vld [vmem:[#allocation4 + $0x68] sm:$0xff]  ;;  %v168_v35 = vld [vmem:[#allocation4 + $0x70] sm:$0xff] }
  0x3d   :  { %501 = vmatpush3.bf16.msra.mxu0 %v500_v9  ;;  %v521_v31 = vpack.c.bf16 %v165_v30, %v164_v29  ;;  %v524_v34 = vpack.c.bf16 %v167_v33, %v166_v32  ;;  %v169_v36 = vld [vmem:[#allocation4 + $0x78] sm:$0xff]  ;;  %v254_v44 = vld [vmem:[#allocation6] sm:$0xff]  ;;  %v255_v45 = vld [vmem:[#allocation6 + $0x8] sm:$0xff] }
  0x3e   :  { %502 = vmatprep.subr.bf16.mxu0 %v647_v1  ;;  %510 = vmatpush3.bf16.msra.mxu1 %v509_v17  ;;  %v527_v37 = vpack.c.bf16 %v169_v36, %v168_v35  ;;  %v530_v46 = vpack.c.bf16 %v255_v45, %v254_v44  ;;  %v256_v47 = vld [vmem:[#allocation6 + $0x10] sm:$0xff]  ;;  %v257_v48 = vld [vmem:[#allocation6 + $0x18] sm:$0xff]  ;;  %v258_v50 = vld [vmem:[#allocation6 + $0x20] sm:$0xff] }
  0x3f   :  { %511 = vmatprep.subr.bf16.mxu1 %v647_v1  ;;  %v533_v49 = vpack.c.bf16 %v257_v48, %v256_v47  ;;  %v259_v51 = vld [vmem:[#allocation6 + $0x28] sm:$0xff]  ;;  %v260_v53 = vld [vmem:[#allocation6 + $0x30] sm:$0xff]  ;;  %v261_v54 = vld [vmem:[#allocation6 + $0x38] sm:$0xff] }
  0x40   :  { %v536_v52 = vpack.c.bf16 %v259_v51, %v258_v50  ;;  %v539_v55 = vpack.c.bf16 %v261_v54, %v260_v53  ;;  %v262_v56 = vld [vmem:[#allocation6 + $0x40] sm:$0xff]  ;;  %v263_v57 = vld [vmem:[#allocation6 + $0x48] sm:$0xff]  ;;  %v264_v59 = vld [vmem:[#allocation6 + $0x50] sm:$0xff] }
  0x41   :  { %504 = vmatpush3.bf16.msra.mxu0 %v503_v18  ;;  %v542_v58 = vpack.c.bf16 %v263_v57, %v262_v56  ;;  %v265_v60 = vld [vmem:[#allocation6 + $0x58] sm:$0xff]  ;;  %v266_v62 = vld [vmem:[#allocation6 + $0x60] sm:$0xff]  ;;  %v267_v63 = vld [vmem:[#allocation6 + $0x68] sm:$0xff] }
  0x42   :  { %421 = vmatprep.subr.mxu0 %v649_v8  ;;  %513 = vmatpush3.bf16.msra.mxu1 %v512_v21  ;;  %v545_v61 = vpack.c.bf16 %v265_v60, %v264_v59  ;;  %v548_v0 = vpack.c.bf16 %v267_v63, %v266_v62  ;;  %v268_v2 = vld [vmem:[#allocation6 + $0x70] sm:$0xff]  ;;  %v269_v3 = vld [vmem:[#allocation6 + $0x78] sm:$0xff]  ;;  %v363_v5 = vld [vmem:[%s774_s3] ss:$0 sm:$0xff] }
  0x43   :  { %514 = vmatprep.subr.bf16.mxu1 %v647_v1  ;;  %v551_v4 = vpack.c.bf16 %v269_v3, %v268_v2 }
  0x45   :  { %422 = vmatpush3.msra.mxu0 %v79_v24 }
  0x46   :  { %529 = vmatprep.subr.bf16.mxu0 %v647_v1  ;;  %516 = vmatpush3.bf16.msra.mxu1 %v515_v25 }
  0x47   :  { %517 = vmatprep.subr.bf16.mxu1 %v647_v1 }
  0x4a   :  { %519 = vmatpush3.bf16.msra.mxu1 %v518_v28 }
  0x4b   :  { %520 = vmatprep.subr.bf16.mxu1 %v647_v1 }
  0x4e   :  { %522 = vmatpush3.bf16.msra.mxu1 %v521_v31 }
  0x4f   :  { %523 = vmatprep.subr.bf16.mxu1 %v647_v1 }
  0x52   :  { %525 = vmatpush3.bf16.msra.mxu1 %v524_v34 }
  0x53   :  { %526 = vmatprep.subr.bf16.mxu1 %v647_v1 }
  0x56   :  { %528 = vmatpush3.bf16.msra.mxu1 %v527_v37 }
  0xb6   :  { %v69_v40 = vpop.permute.xlu0 %68 }
  0xb7   :  { %vm70_vm2 = vcmp.eq.s32.totalorder %v66_v39, %v69_v40 }
  0xb8   :  { %v361_v41 = vsel %vm70_vm2, 1.0, %v649_v8 }
  0xb9   :  { %424 = vmatmul.mubr.msk.f32.vlgmr.msra.gmra.mrb[0].mxu0 %vm80_vm1, %v361_v41 }
  0xba   :  { %493 = vmatprep.mubr.msk.f32.mxu0 %vm648_vm0, %v649_v8  ;;  %531 = vmatpush3.bf16.msra.mxu0 %v530_v46 }
  0xbb   :  { %532 = vmatprep.subr.bf16.mxu0 %v647_v1 }
  0xbe   :  { %534 = vmatpush3.bf16.msra.mxu0 %v533_v49 }
  0xbf   :  { %535 = vmatprep.subr.bf16.mxu0 %v647_v1 }
  0xc2   :  { %537 = vmatpush3.bf16.msra.mxu0 %v536_v52 }
  0xc3   :  { %538 = vmatprep.subr.bf16.mxu0 %v647_v1 }
  0xc6   :  { %540 = vmatpush3.bf16.msra.mxu0 %v539_v55 }
  0xc7   :  { %541 = vmatprep.subr.bf16.mxu0 %v647_v1 }
  0xca   :  { %543 = vmatpush3.bf16.msra.mxu0 %v542_v58 }
  0xcb   :  { %544 = vmatprep.subr.bf16.mxu0 %v647_v1 }
  0xce   :  { %546 = vmatpush3.bf16.msra.mxu0 %v545_v61 }
  0xcf   :  { %547 = vmatprep.subr.bf16.mxu0 %v647_v1 }
  0xd2   :  { %549 = vmatpush3.bf16.msra.mxu0 %v548_v0 }
  0xd3   :  { %550 = vmatprep.subr.bf16.mxu0 %v647_v1  ;;  %v365_v1 = vld [vmem:[%s776_s5] ss:$0 sm:$0xff] }
  0xd6   :  { %552 = vmatpush3.bf16.msra.mxu0 %v551_v4 }
 0x18c   :  { %v150_v42 = vpop.f32.mrb[0].mxu0 }
 0x18d   :  { %v425_v43 = vpop.f32.mrb[1].mxu0  ;;  %459 = vmatmul.mubr.f32.vlgmr.msra.gmra.mrb[0].mxu1 %v150_v42 }
 0x260   :  { %v243_v6 = vpop.f32.mrb[0].mxu1 }
 0x261   :  { %v244_v7 = vadd.f32 %v363_v5, %v243_v6  ;;  %v460_v8 = vpop.f32.mrb[1].mxu1 }
 0x263   :  { %v364_v9 = vmul.f32 -1.442695, %v244_v7 }
 0x265   :  { %563 = vpow2.f32 %v364_v9 }
 0x26f   :  { %v564_v10 = vpop.eup %563 }
 0x270   :  { %v250_v11 = vadd.f32 1.0, %v564_v10 }
 0x272   :  { %565 = vrcp.f32 %v250_v11 }
 0x27c   :  { %v566_v12 = vpop.eup %565 }
 0x27d   :  { %v253_v13 = vmul.f32 %v566_v12, %v244_v7 }
 0x27f   :  { %494 = vmatmul.mubr.f32.vlgmr.msra.gmra.mrb[2].mxu0 %v253_v13 }
 0x352   :  { %v343_v14 = vpop.f32.mrb[2].mxu0 }
 0x353   :  { %v344_v15 = vadd.f32 %v365_v1, %v343_v14  ;;  %v495_v16 = vpop.f32.mrb[3].mxu0 }
 0x355   :  { %v366_v17 = vmul.f32 -1.442695, %v344_v15 }
 0x357   :  { %567 = vpow2.f32 %v366_v17 }
 0x361   :  { %v568_v18 = vpop.eup %567 }
 0x362   :  { %v350_v19 = vadd.f32 1.0, %v568_v18 }
 0x364   :  { %569 = vrcp.f32 %v350_v19 }
 0x36e   :  { %v570_v20 = vpop.eup %569 }
 0x36f   :  { %v353_v21 = vmul.f32 %v570_v20, %v344_v15 }
 0x371   :  { %354 = vst [vmem:[%s777_s6] sm:$0xff] %v353_v21 }
 0x372   :  { %359 = vsyncpa [#allocation3], 1 }
 0x373   :  { %360 = vsyncpa [#allocation5], 1 }

</bundles_post_ra>
